<compile_context>
chip_gen: v5e
topology: v5e:2x2
jax: 0.10.0
libtpu: 0.0.40
codegen_flags: <defaults>
</compile_context>

<pallas_src>
import functools

import jax
import jax.numpy as jnp
from jax.experimental import pallas as pl
from jax.experimental.pallas import tpu as pltpu


def _cdiv(a, b):
    return -(-a // b)


def _round_up(a, b):
    return _cdiv(a, b) * b


def _ensemble_kernel(b_ref, x_ref, w_ref, o_ref, *, strategy):
    # b_ref : (Ncol,)   f32 bias scalars in SMEM.
    # x_ref : (TB, H)   batch tile in the caller's dtype (VMEM, pipelined).
    # w_ref : (H, Ncol) stacked sub-model weights (VMEM, resident across steps).
    # o_ref : (1, TB)   f32 lane-dense output row for this tile.
    preds = jnp.dot(
        x_ref[...], w_ref[...], preferred_element_type=jnp.float32
    )  # (TB, Ncol) f32 accumulation on the MXU

    # Put the batch on the 128-lane axis: the combine runs full-width on the VPU
    # and the store is an unmasked, lane-dense (1, TB) row.  preds is tiny
    # (TB x Ncol), so this XLU relayout hides under the x DMA.
    preds_t = jnp.transpose(preds, (1, 0))  # (Ncol, TB) f32

    if strategy == "mean":
        # Mean was folded into the weights in the wrapper -> Ncol == 1.
        o_ref[...] = preds_t + b_ref[0]
    elif strategy == "supervisor":
        # torch: sign = sign(|p1 - p0|); out = p2*sign + 0.5*(p0+p1)*(1-sign)
        # Kept fully f32 so the discontinuous gate matches the reference.
        p0 = preds_t[0:1, :] + b_ref[0]
        p1 = preds_t[1:2, :] + b_ref[1]
        p2 = preds_t[2:3, :] + b_ref[2]
        sign = jnp.sign(jnp.abs(p1 - p0))
        o_ref[...] = p2 * sign + 0.5 * (p0 + p1) * (1.0 - sign)
    else:
        raise NotImplementedError(strategy)


def ensemble_forward(x, W, b, voting_strategy="mean", *, tile_rows=None):
    """Fused ensemble forward.

    x: (B, H) batch (streamed to the kernel in its native dtype -- no wrapper cast).
    W: (H, N) column-stacked Linear(H, 1) weights of the N sub-models.
    b: (N,)  biases.
    """
    x = jnp.asarray(x)
    W = jnp.asarray(W)
    b = jnp.asarray(b, jnp.float32).reshape(-1)

    B, H = x.shape
    N = W.shape[1]

    if voting_strategy == "supervisor" and N != 3:
        raise RuntimeError("Must be a supervisor with 3")
    if voting_strategy == "median":
        # TODO(synk): torch.median(dim=1) returns (values, indices); index
        # extraction is not implemented in the Pallas kernel.
        raise NotImplementedError("median voting not implemented")
    if voting_strategy not in ("mean", "supervisor"):
        raise Exception("Invalid voting strategy")

    if voting_strategy == "mean":
        # Fold the ensemble average into the parameters: the kernel becomes a
        # pure (TB, H) @ (H, 1) matvec bound only by streaming x from HBM.
        # (Reduction reorder vs torch's mean-of-predictions: identical in exact
        # arithmetic, not bit-identical in f32.)
        w_used = jnp.mean(W, axis=1, keepdims=True)  # (H, 1)
        b_used = jnp.mean(b, keepdims=True)          # (1,)
    else:
        w_used = W                                    # (H, 3)
        b_used = b                                    # (3,)
    n_col = w_used.shape[1]

    # --- batch tiling --------------------------------------------------------
    # Target ~8 MiB x tiles: amortizes the ~0.35us fixed per-grid-step pipeline
    # overhead to a few % on v6e/v7x while the double-buffered tile pair stays
    # comfortably inside every generation's VMEM budget.  tb is a multiple of
    # 128 so the (1, tb) output block is an exact lane multiple (unmasked vst).
    itemsize = x.dtype.itemsize
    if tile_rows is None:
        tile_rows = (8 * 1024 * 1024) // max(1, H * itemsize)
        tile_rows = max(128, min(tile_rows, 32768))
    tb = _round_up(min(tile_rows, _round_up(B, 128)), 128)
    num_tiles = _cdiv(B, tb)

    # No wrapper-side pad: the final block may be partial; Pallas clamps the
    # DMA.  Rows are independent, so garbage in out-of-range rows only lands in
    # output rows that are trimmed by [:B] below.  (Do not add a cross-row
    # reduction to this epilogue without revisiting that invariant.)

    kernel = functools.partial(_ensemble_kernel, strategy=voting_strategy)

    tile_bytes = tb * H * itemsize
    vmem_limit = int(
        min(48 * 1024 * 1024, max(32 * 1024 * 1024, 2 * tile_bytes + 4 * 1024 * 1024))
    )

    out = pl.pallas_call(
        kernel,
        out_shape=jax.ShapeDtypeStruct((num_tiles, 1, tb), jnp.float32),
        grid=(num_tiles,),
        in_specs=[
            # Bias scalars: whole array resident in SMEM, no per-step VMEM DMA.
            pl.BlockSpec(memory_space=pltpu.MemorySpace.SMEM),
            # x: one (tb, H) batch tile per grid step (auto double-buffered),
            # streamed in the caller's native dtype -- no extra HBM cast pass.
            pl.BlockSpec((tb, H), lambda i: (i, 0)),
            # W: full (H, n_col) block, same index every step -> stays resident.
            pl.BlockSpec((H, n_col), lambda i: (0, 0)),
        ],
        # Lane-dense output: one (1, tb) row per tile; leading dim squeezed.
        out_specs=pl.BlockSpec((None, 1, tb), lambda i: (i, 0, 0)),
        compiler_params=pltpu.CompilerParams(
            dimension_semantics=("parallel",),  # batch axis; megacore-shardable
            vmem_limit_bytes=vmem_limit,
        ),
        cost_estimate=pl.CostEstimate(
            flops=2 * B * H * n_col,
            transcendentals=0,
            bytes_accessed=B * H * itemsize
            + H * n_col * W.dtype.itemsize
            + B * 4
            + n_col * 4,
        ),
    )(b_used, x, w_used)

    flat = out.reshape(num_tiles * tb)[:B]
    if voting_strategy == "mean":
        return flat            # torch: concat_preds.mean(dim=1) -> (B,)
    return flat[:, None]       # supervisor combine keeps sub-model shape (B, 1)


def _reference(x, W, b, voting_strategy="mean"):
    preds = x @ W + b.reshape(1, -1)  # (B, N)
    if voting_strategy == "mean":
        return preds.mean(axis=1)
    p0, p1, p2 = preds[:, 0:1], preds[:, 1:2], preds[:, 2:3]
    sign = jnp.sign(jnp.abs(p1 - p0))
    return p2 * sign + 0.5 * (p0 + p1) * (1.0 - sign)


if __name__ == "__main__":
    B, H, N_MODELS = 8, 128, 3  # 3 sub-models (supervisor-compatible)

    key = jax.random.PRNGKey(0)
    kx, kw, kb = jax.random.split(key, 3)
    x = jax.random.normal(kx, (B, H), dtype=jnp.float32)
    # Deterministic synthetic sub-model parameters (Linear(H, 1) each),
    # stacked column-wise so the ensemble is one matmul.
    W = jax.random.normal(kw, (H, N_MODELS), dtype=jnp.float32) * 0.05
    b = jax.random.normal(kb, (N_MODELS,), dtype=jnp.float32) * 0.05

    out_mean = jax.block_until_ready(ensemble_forward(x, W, b, "mean"))
    out_sup = jax.block_until_ready(ensemble_forward(x, W, b, "supervisor"))

    ref_mean = _reference(x, W, b, "mean")
    ref_sup = _reference(x, W, b, "supervisor")
    assert out_mean.shape == (B,)
    assert out_sup.shape == (B, 1)
    # Full f32 path -> tight tolerance vs the f32 reference.
    assert jnp.allclose(out_mean, ref_mean, atol=1e-4, rtol=1e-4)
    assert jnp.allclose(out_sup, ref_sup, atol=1e-4, rtol=1e-4)

    # Exercise the multi-tile path with a partial final block (no wrapper pad):
    # B2 = 300, tb = 128 -> 3 grid steps, last tile has 44 valid rows.
    B2 = 300
    x2 = jax.random.normal(jax.random.PRNGKey(1), (B2, H), dtype=jnp.float32)
    out2 = jax.block_until_ready(ensemble_forward(x2, W, b, "mean", tile_rows=128))
    ref2 = _reference(x2, W, b, "mean")
    assert out2.shape == (B2,)
    assert jnp.allclose(out2, ref2, atol=1e-4, rtol=1e-4)

    print("KERNEL_OK")
</pallas_src>

<mosaic_0001>
module attributes {stable_mosaic.version = 11 : i64} {
  func.func @_ensemble_kernel(%arg0: i32, %arg1: memref<1xf32, #tpu.memory_space<smem>>, %arg2: memref<128x128xf32, #tpu.memory_space<vmem>>, %arg3: memref<128x1xf32, #tpu.memory_space<vmem>>, %arg4: memref<1x1x128xf32, #tpu.memory_space<vmem>>) attributes {dimension_semantics = [#tpu.dimension_semantics<parallel>], iteration_bounds = array<i64: 1>, scalar_prefetch = 0 : i64, scratch_operands = 0 : i64, tpu.core_type = #tpu.core_type<tc>, window_params = [{transform_indices = @transform_0, window_bounds = array<i64: 1>}, {transform_indices = @transform_1, window_bounds = array<i64: 128, 128>}, {pipeline_mode = #tpu.pipeline_mode<synchronous>, transform_indices = @transform_2, window_bounds = array<i64: 128, 1>}, {transform_indices = @transform_3, window_bounds = array<i64: 1, 1, 128>}]} {
    %c0 = arith.constant 0 : index
    %c0_0 = arith.constant 0 : index
    %0 = vector.load %arg2[%c0, %c0_0] : memref<128x128xf32, #tpu.memory_space<vmem>>, vector<128x128xf32>
    %c0_1 = arith.constant 0 : index
    %c0_2 = arith.constant 0 : index
    %1 = vector.load %arg3[%c0_1, %c0_2] : memref<128x1xf32, #tpu.memory_space<vmem>>, vector<128x1xf32>
    %cst = arith.constant dense<0.000000e+00> : vector<128x1xf32>
    %2 = tpu.matmul %0, %1, %cst {dimension_numbers = #tpu.dot_dimension_numbers<[1], [0], [0], [1], [0, 0, 1, 1], [], []>} : vector<128x128xf32>, vector<128x1xf32>, vector<128x1xf32> -> vector<128x1xf32>
    %3 = tpu.transpose %2, [1, 0] : vector<128x1xf32> -> vector<1x128xf32>
    %c0_3 = arith.constant 0 : index
    %4 = memref.load %arg1[%c0_3] : memref<1xf32, #tpu.memory_space<smem>>
    %5 = vector.broadcast %4 : f32 to vector<1x128xf32>
    %6 = arith.addf %3, %5 : vector<1x128xf32>
    %c0_4 = arith.constant 0 : index
    %c0_5 = arith.constant 0 : index
    %c0_6 = arith.constant 0 : index
    %7 = vector.load %arg4[%c0_4, %c0_5, %c0_6] : memref<1x1x128xf32, #tpu.memory_space<vmem>>, vector<1x1x128xf32>
    %8 = vector.shape_cast %7 : vector<1x1x128xf32> to vector<1x128xf32>
    %9 = vector.shape_cast %6 : vector<1x128xf32> to vector<1x1x128xf32>
    tpu.vector_store %arg4[%c0_4, %c0_5, %c0_6], %9 {strides = array<i32>} : memref<1x1x128xf32, #tpu.memory_space<vmem>>, vector<1x1x128xf32>,
    return
  }
  func.func @transform_0(%arg0: i32) -> i32 {
    %c0_i32 = arith.constant 0 : i32
    %c0_i32_0 = arith.constant 0 : i32
    return %c0_i32 : i32
  }
  func.func @transform_1(%arg0: i32) -> (i32, i32) {
    %c0_i32 = arith.constant 0 : i32
    %c0_i32_0 = arith.constant 0 : i32
    return %arg0, %c0_i32 : i32, i32
  }
  func.func @transform_2(%arg0: i32) -> (i32, i32) {
    %c0_i32 = arith.constant 0 : i32
    %c0_i32_0 = arith.constant 0 : i32
    %c0_i32_1 = arith.constant 0 : i32
    return %c0_i32, %c0_i32_0 : i32, i32
  }
  func.func @transform_3(%arg0: i32) -> (i32, i32, i32) {
    %c0_i32 = arith.constant 0 : i32
    %c0_i32_0 = arith.constant 0 : i32
    %c0_i32_1 = arith.constant 0 : i32
    return %arg0, %c0_i32, %c0_i32_0 : i32, i32, i32
  }
}

</mosaic_0001>

<bundles_post_ra>
// kernel: tpu_custom_call.1
= control target key start
LH: loop header
LB: loop body
LE: loop exit
PB: predicated region body
PF: predicated region fallthrough
CT: control target
= control target key end

     0   :  { %s363_s0 = inlined_call_operand.<no memory space> [shape: f32[1], index: 0, kind: input, shape index: {}]   ;;  %s364_s1 = inlined_call_operand.vmem [shape: f32[8,128], index: 1, kind: input, shape index: {}]   ;;  %s365_s2 = inlined_call_operand.vmem [shape: f32[128,1], index: 2, kind: input, shape index: {}]   ;;  %s366_s3 = inlined_call_operand.hbm [shape: f32[1,1,128], index: 3, kind: output, shape index: {}]  }
   0x1   :  { %v47_v0 = vld [vmem:[%s365_s2 + $0x78] sm:$0xff]  ;;  %v46_v1 = vld [vmem:[%s365_s2 + $0x70] sm:$0xff]  ;;  %v45_v2 = vld [vmem:[%s365_s2 + $0x68] sm:$0xff] }
   0x2   :  { %48 = vmatpush.msra.mxu0 %v47_v0  ;;  %165 = vmatpush.msra.mxu1 %v47_v0  ;;  %v44_v3 = vld [vmem:[%s365_s2 + $0x60] sm:$0xff]  ;;  %v43_v4 = vld [vmem:[%s365_s2 + $0x58] sm:$0xff] }
   0x3   :  { %166 = vmatpush.msra.mxu2 %v47_v0  ;;  %167 = vmatpush.msra.mxu3 %v47_v0 }
   0x4   :  { %49 = vmatpush.msra.mxu0 %v46_v1  ;;  %168 = vmatpush.msra.mxu1 %v46_v1 }
   0x5   :  { %169 = vmatpush.msra.mxu2 %v46_v1  ;;  %170 = vmatpush.msra.mxu3 %v46_v1 }
   0x6   :  { %50 = vmatpush.msra.mxu0 %v45_v2  ;;  %171 = vmatpush.msra.mxu1 %v45_v2 }
   0x7   :  { %172 = vmatpush.msra.mxu2 %v45_v2  ;;  %173 = vmatpush.msra.mxu3 %v45_v2 }
   0x8   :  { %9 = vsyncpa [#allocation4], 0  ;;  %51 = vmatpush.msra.mxu0 %v44_v3  ;;  %174 = vmatpush.msra.mxu1 %v44_v3  ;;  %v42_v5 = vld [vmem:[%s365_s2 + $0x50] sm:$0xff]  ;;  %v41_v6 = vld [vmem:[%s365_s2 + $0x48] sm:$0xff]  ;;  %v146_v48 = vstv %s363_s0  ;;  %s240_s22 = smov [#allocation3]   ;;  %s156_s25 = sshll.u32 %s366_s3, 4  ;;  %s157_s25 = int_to_ptr.hbm [resolvable:$true] %s156_s25 }
   0x9   :  { %175 = vmatpush.msra.mxu2 %v44_v3  ;;  %176 = vmatpush.msra.mxu3 %v44_v3  ;;  %v40_v7 = vld [vmem:[%s365_s2 + $0x40] sm:$0xff]  ;;  %v39_v8 = vld [vmem:[%s365_s2 + $0x38] sm:$0xff]  ;;  %v38_v9 = vld [vmem:[%s365_s2 + $0x30] sm:$0xff] }
   0xa   :  { %52 = vmatpush.msra.mxu0 %v43_v4  ;;  %177 = vmatpush.msra.mxu1 %v43_v4  ;;  %v37_v10 = vld [vmem:[%s365_s2 + $0x28] sm:$0xff]  ;;  %v36_v11 = vld [vmem:[%s365_s2 + $0x20] sm:$0xff]  ;;  %v35_v12 = vld [vmem:[%s365_s2 + $0x18] sm:$0xff] }
   0xb   :  { %178 = vmatpush.msra.mxu2 %v43_v4  ;;  %179 = vmatpush.msra.mxu3 %v43_v4  ;;  %v34_v13 = vld [vmem:[%s365_s2 + $0x10] sm:$0xff]  ;;  %v33_v14 = vld [vmem:[%s365_s2 + $0x8] sm:$0xff]  ;;  %v32_v15 = vld [vmem:[%s365_s2] sm:$0xff]  ;;  %s154_s2 = sshll.u32 %s240_s22, 4  ;;  %s155_s2 = int_to_ptr.vmem [resolvable:$true] %s154_s2 }
   0xc   :  { %53 = vmatpush.msra.mxu0 %v42_v5  ;;  %180 = vmatpush.msra.mxu1 %v42_v5  ;;  %v16_v16 = vld [vmem:[%s364_s1] sm:$0xff]  ;;  %v17_v20 = vld [vmem:[%s364_s1 + $0x8] sm:$0xff]  ;;  %v18_v24 = vld [vmem:[%s364_s1 + $0x10] sm:$0xff] }
   0xd   :  { %181 = vmatpush.msra.mxu2 %v42_v5  ;;  %182 = vmatpush.msra.mxu3 %v42_v5  ;;  %v20_v17 = vld [vmem:[%s364_s1 + $0x20] sm:$0xff]  ;;  %v21_v21 = vld [vmem:[%s364_s1 + $0x28] sm:$0xff]  ;;  %v22_v25 = vld [vmem:[%s364_s1 + $0x30] sm:$0xff] }
   0xe   :  { %54 = vmatpush.msra.mxu0 %v41_v6  ;;  %183 = vmatpush.msra.mxu1 %v41_v6  ;;  %v24_v18 = vld [vmem:[%s364_s1 + $0x40] sm:$0xff]  ;;  %v25_v22 = vld [vmem:[%s364_s1 + $0x48] sm:$0xff]  ;;  %v26_v26 = vld [vmem:[%s364_s1 + $0x50] sm:$0xff] }
   0xf   :  { %184 = vmatpush.msra.mxu2 %v41_v6  ;;  %185 = vmatpush.msra.mxu3 %v41_v6  ;;  %v28_v19 = vld [vmem:[%s364_s1 + $0x60] sm:$0xff]  ;;  %v29_v23 = vld [vmem:[%s364_s1 + $0x68] sm:$0xff]  ;;  %v30_v27 = vld [vmem:[%s364_s1 + $0x70] sm:$0xff] }
  0x10   :  { %55 = vmatpush.msra.mxu0 %v40_v7  ;;  %186 = vmatpush.msra.mxu1 %v40_v7  ;;  %v19_v28 = vld [vmem:[%s364_s1 + $0x18] sm:$0xff] }
  0x11   :  { %187 = vmatpush.msra.mxu2 %v40_v7  ;;  %188 = vmatpush.msra.mxu3 %v40_v7  ;;  %v23_v29 = vld [vmem:[%s364_s1 + $0x38] sm:$0xff] }
  0x12   :  { %56 = vmatpush.msra.mxu0 %v39_v8  ;;  %189 = vmatpush.msra.mxu1 %v39_v8  ;;  %v27_v30 = vld [vmem:[%s364_s1 + $0x58] sm:$0xff] }
  0x13   :  { %190 = vmatpush.msra.mxu2 %v39_v8  ;;  %191 = vmatpush.msra.mxu3 %v39_v8  ;;  %v31_v31 = vld [vmem:[%s364_s1 + $0x78] sm:$0xff] }
  0x14   :  { %57 = vmatpush.msra.mxu0 %v38_v9  ;;  %192 = vmatpush.msra.mxu1 %v38_v9 }
  0x15   :  { %193 = vmatpush.msra.mxu2 %v38_v9  ;;  %194 = vmatpush.msra.mxu3 %v38_v9 }
  0x16   :  { %58 = vmatpush.msra.mxu0 %v37_v10  ;;  %195 = vmatpush.msra.mxu1 %v37_v10 }
  0x17   :  { %196 = vmatpush.msra.mxu2 %v37_v10  ;;  %197 = vmatpush.msra.mxu3 %v37_v10 }
  0x18   :  { %59 = vmatpush.msra.mxu0 %v36_v11  ;;  %198 = vmatpush.msra.mxu1 %v36_v11 }
  0x19   :  { %199 = vmatpush.msra.mxu2 %v36_v11  ;;  %200 = vmatpush.msra.mxu3 %v36_v11 }
  0x1a   :  { %60 = vmatpush.msra.mxu0 %v35_v12  ;;  %201 = vmatpush.msra.mxu1 %v35_v12 }
  0x1b   :  { %202 = vmatpush.msra.mxu2 %v35_v12  ;;  %203 = vmatpush.msra.mxu3 %v35_v12 }
  0x1c   :  { %61 = vmatpush.msra.mxu0 %v34_v13  ;;  %204 = vmatpush.msra.mxu1 %v34_v13 }
  0x1d   :  { %205 = vmatpush.msra.mxu2 %v34_v13  ;;  %206 = vmatpush.msra.mxu3 %v34_v13 }
  0x1e   :  { %62 = vmatpush.msra.mxu0 %v33_v14  ;;  %207 = vmatpush.msra.mxu1 %v33_v14 }
  0x1f   :  { %208 = vmatpush.msra.mxu2 %v33_v14  ;;  %209 = vmatpush.msra.mxu3 %v33_v14 }
  0x20   :  { %63 = vmatpush.msra.mxu0 %v32_v15  ;;  %210 = vmatpush.msra.mxu1 %v32_v15 }
  0x21   :  { %64 = vmatmul.f32.vlgmr.msra.gmra.mxu0 %v16_v16  ;;  %76 = vmatmul.f32.vlgmr.msra.gmra.mxu1 %v20_v17 }
  0x22   :  { %211 = vmatpush.msra.mxu2 %v32_v15  ;;  %212 = vmatpush.msra.mxu3 %v32_v15 }
  0x23   :  { %88 = vmatmul.f32.vlgmr.msra.gmra.mxu2 %v24_v18  ;;  %100 = vmatmul.f32.vlgmr.msra.gmra.mxu3 %v28_v19 }
  0x29   :  { %67 = vmatmul.f32.gmra.mxu0 %v17_v20  ;;  %79 = vmatmul.f32.gmra.mxu1 %v21_v21 }
  0x2b   :  { %91 = vmatmul.f32.gmra.mxu2 %v25_v22  ;;  %103 = vmatmul.f32.gmra.mxu3 %v29_v23 }
  0x31   :  { %70 = vmatmul.f32.gmra.mxu0 %v18_v24  ;;  %82 = vmatmul.f32.gmra.mxu1 %v22_v25 }
  0x33   :  { %94 = vmatmul.f32.gmra.mxu2 %v26_v26  ;;  %106 = vmatmul.f32.gmra.mxu3 %v30_v27 }
  0x39   :  { %73 = vmatmul.f32.gmra.mxu0 %v19_v28  ;;  %85 = vmatmul.f32.gmra.mxu1 %v23_v29 }
  0x3b   :  { %97 = vmatmul.f32.gmra.mxu2 %v27_v30  ;;  %109 = vmatmul.f32.gmra.mxu3 %v31_v31 }
  0x9e   :  { %v65_v32 = vpop.f32.mrf.mxu0  ;;  %v77_v36 = vpop.f32.mrf.mxu1 }
  0x9f   :  { %113 = vxpose.xlu0.b32.start [1/16] (narrow) %v65_v32, 8 }
  0xa6   :  { %v68_v33 = vpop.f32.mrf.mxu0  ;;  %v80_v37 = vpop.f32.mrf.mxu1 }
  0xa7   :  { %114 = vxpose.xlu0.b32.cont [2/16] (narrow) %v68_v33, 8  ;;  %v89_v40 = vpop.f32.mrf.mxu2  ;;  %v101_v44 = vpop.f32.mrf.mxu3 }
  0xae   :  { %v71_v34 = vpop.f32.mrf.mxu0  ;;  %v83_v38 = vpop.f32.mrf.mxu1 }
  0xaf   :  { %115 = vxpose.xlu0.b32.cont [3/16] (narrow) %v71_v34, 8  ;;  %v92_v41 = vpop.f32.mrf.mxu2  ;;  %v104_v45 = vpop.f32.mrf.mxu3 }
  0xb6   :  { %v74_v35 = vpop.f32.mrf.mxu0  ;;  %v86_v39 = vpop.f32.mrf.mxu1 }
  0xb7   :  { %116 = vxpose.xlu0.b32.cont [4/16] (narrow) %v74_v35, 8  ;;  %v95_v42 = vpop.f32.mrf.mxu2  ;;  %v107_v46 = vpop.f32.mrf.mxu3 }
  0xbf   :  { %117 = vxpose.xlu0.b32.cont [5/16] (narrow) %v77_v36, 8  ;;  %v98_v43 = vpop.f32.mrf.mxu2  ;;  %v110_v47 = vpop.f32.mrf.mxu3 }
  0xc7   :  { %118 = vxpose.xlu0.b32.cont [6/16] (narrow) %v80_v37, 8 }
  0xcf   :  { %119 = vxpose.xlu0.b32.cont [7/16] (narrow) %v83_v38, 8 }
  0xd7   :  { %120 = vxpose.xlu0.b32.cont [8/16] (narrow) %v86_v39, 8 }
  0xdf   :  { %121 = vxpose.xlu0.b32.cont [9/16] (narrow) %v89_v40, 8 }
  0xe7   :  { %122 = vxpose.xlu0.b32.cont [10/16] (narrow) %v92_v41, 8 }
  0xef   :  { %123 = vxpose.xlu0.b32.cont [11/16] (narrow) %v95_v42, 8 }
  0xf7   :  { %124 = vxpose.xlu0.b32.cont [12/16] (narrow) %v98_v43, 8 }
  0xff   :  { %125 = vxpose.xlu0.b32.cont [13/16] (narrow) %v101_v44, 8 }
 0x107   :  { %126 = vxpose.xlu0.b32.cont [14/16] (narrow) %v104_v45, 8 }
 0x10f   :  { %127 = vxpose.xlu0.b32.cont [15/16] (narrow) %v107_v46, 8 }
 0x117   :  { %128 = vxpose.xlu0.b32.end [16/16] (narrow) %v110_v47, 8 }
 0x143   :  { %v129_v49 = vpop.trf.xlu0 }
 0x144   :  { %v147_v50 = vadd.f32 %v146_v48, %v129_v49 }
 0x146   :  { %148 = vst [vmem:[#allocation3] sm:$0x1] %v147_v50 }
 0x147   :  { %159 = dma.vmem_to_hbm [thread:$0]  %s155_s2, 16, %s157_s25, [#allocation4]  }
 0x148   :  { %238 = dma.done.wait [#allocation4], 16  }
 0x149   :  { %239 = vsyncadd [#allocation4], 4294967280 }
 0x14a   :  { %164 = vsyncpa [#allocation4], 1 }

</bundles_post_ra>
